<compile_context>
chip_gen: v7x
topology: tpu7x:2x2x1
jax: 0.10.0
libtpu: 0.0.40
codegen_flags: <defaults>
</compile_context>

<pallas_src>
import numpy as np
import jax
import jax.numpy as jnp
from jax.experimental import pallas as pl
from jax.experimental.pallas import tpu as pltpu


# ----------------------------------------------------------------------------- helpers
def _round_up(x, m):
    return ((x + m - 1) // m) * m


def _pick_tile(padded_dim, candidates):
    for c in candidates:
        if padded_dim % c == 0:
            return c
    return padded_dim


# ----------------------------------------------------------------------------- kernels
def matmul_add_kernel(a_ref, b_ref, d_ref, o_ref, acc_ref):
    """O = A @ B + D, accumulated in f32 over the k grid axis."""
    k = pl.program_id(2)

    @pl.when(k == 0)
    def _():
        acc_ref[...] = jnp.zeros_like(acc_ref)

    acc_ref[...] += jnp.dot(a_ref[...], b_ref[...],
                            preferred_element_type=jnp.float32)

    @pl.when(k == pl.num_programs(2) - 1)
    def _():
        o_ref[...] = (acc_ref[...] + d_ref[...].astype(jnp.float32)
                      ).astype(o_ref.dtype)


def transition_kernel(x_ref, scale_ref, shift_ref, o_ref):
    """ReLU + BatchNorm1d(eval) affine (+ Dropout eval = identity)."""
    y = jnp.maximum(x_ref[...], 0.0) * scale_ref[...] + shift_ref[...]
    o_ref[...] = y.astype(o_ref.dtype)


# ----------------------------------------------------------------------------- wrappers
def tiled_matmul_add(a, b, d, out_dtype):
    """out = a @ b + d.  a:[M,K], b:[K,N], d:[M or 1, N]; all dims pre-padded."""
    m, k = a.shape
    k2, n = b.shape
    assert k == k2, (a.shape, b.shape)

    tm = _pick_tile(m, (256, 128))
    tn = _pick_tile(n, (256, 128))
    tk = _pick_tile(k, (512, 256, 128))
    grid = (m // tm, n // tn, k // tk)

    d_rows = d.shape[0]
    d_block = (1 if d_rows == 1 else tm, tn)
    d_map = (lambda i, j, kk: (0, j)) if d_rows == 1 else (lambda i, j, kk: (i, j))

    bytes_needed = 2 * (tm * tk * a.dtype.itemsize
                        + tk * tn * b.dtype.itemsize
                        + d_block[0] * tn * d.dtype.itemsize
                        + tm * tn * np.dtype(out_dtype).itemsize)
    bytes_needed += tm * tn * 4  # f32 accumulator scratch
    vmem_limit = int(min(max(2 * bytes_needed + (1 << 20), 16 * 1024 * 1024),
                         48 * 1024 * 1024))

    return pl.pallas_call(
        matmul_add_kernel,
        out_shape=jax.ShapeDtypeStruct((m, n), out_dtype),
        grid_spec=pltpu.PrefetchScalarGridSpec(
            num_scalar_prefetch=0,
            grid=grid,
            in_specs=[
                pl.BlockSpec((tm, tk), lambda i, j, kk: (i, kk)),
                pl.BlockSpec((tk, tn), lambda i, j, kk: (kk, j)),
                pl.BlockSpec(d_block, d_map),
            ],
            out_specs=pl.BlockSpec((tm, tn), lambda i, j, kk: (i, j)),
            scratch_shapes=[pltpu.VMEM((tm, tn), jnp.float32)],
        ),
        compiler_params=pltpu.CompilerParams(
            dimension_semantics=("parallel", "parallel", "arbitrary"),
            vmem_limit_bytes=vmem_limit,
        ),
    )(a, b, d)


def tiled_transition(x, scale, shift, out_dtype):
    """Elementwise ReLU + affine, row-tiled.  x:[M,N], scale/shift:[1,N]."""
    m, n = x.shape
    tm = _pick_tile(m, (256, 128))
    grid = (m // tm,)
    return pl.pallas_call(
        transition_kernel,
        out_shape=jax.ShapeDtypeStruct((m, n), out_dtype),
        grid_spec=pltpu.PrefetchScalarGridSpec(
            num_scalar_prefetch=0,
            grid=grid,
            in_specs=[
                pl.BlockSpec((tm, n), lambda i: (i, 0)),
                pl.BlockSpec((1, n), lambda i: (0, 0)),
                pl.BlockSpec((1, n), lambda i: (0, 0)),
            ],
            out_specs=pl.BlockSpec((tm, n), lambda i: (i, 0)),
        ),
        compiler_params=pltpu.CompilerParams(
            dimension_semantics=("parallel",)),
    )(x, scale, shift)


# ----------------------------------------------------------------------------- glue
def build_mean_adj(edge_index, num_nodes, dtype=jnp.float32):
    """Dense mean-aggregation matrix: A[dst, src] = 1/deg_in(dst) (SAGEConv aggr='mean')."""
    src, dst = edge_index[0], edge_index[1]
    ones = jnp.ones(src.shape, dtype)
    deg = jnp.zeros((num_nodes,), dtype).at[dst].add(ones)
    inv_deg = jnp.where(deg > 0, 1.0 / deg, jnp.array(0.0, dtype))
    a = jnp.zeros((num_nodes, num_nodes), dtype).at[dst, src].add(ones)
    return a * inv_deg[:, None]


def sage_encoder_forward(x, edge_index, layer_params, bn_params, use_bf16=True):
    """x: [N, F] f32; edge_index: [2, E] int32;
       layer_params: list of (W_l [out,in], W_r [out,in], b [out]) per SAGEConv;
       bn_params: (gamma, beta, running_mean, running_var, eps) with dim == hidden."""
    n, f = x.shape
    np_nodes = _round_up(n, 128)
    mat_dtype = jnp.bfloat16 if use_bf16 else x.dtype

    # dense normalized adjacency (O(E) scatter, plain-JAX glue), padded + cast once
    a = build_mean_adj(edge_index, n, jnp.float32)
    a_p = jnp.pad(a, ((0, np_nodes - n), (0, np_nodes - n))).astype(mat_dtype)

    gamma, beta, mean, var, eps = bn_params
    bn_scale = gamma * jax.lax.rsqrt(var + eps)
    bn_shift = beta - mean * bn_scale

    c_in = f
    cp_in = _round_up(f, 128)
    h_p = jnp.pad(x, ((0, np_nodes - n), (0, cp_in - f))).astype(mat_dtype)

    n_layers = len(layer_params)
    for li, (wl, wr, b) in enumerate(layer_params):
        c_out = wl.shape[0]
        cp_out = _round_up(c_out, 128)

        wl_t = jnp.pad(wl.T, ((0, cp_in - c_in), (0, cp_out - c_out))).astype(mat_dtype)
        wr_t = jnp.pad(wr.T, ((0, cp_in - c_in), (0, cp_out - c_out))).astype(mat_dtype)
        b_row = jnp.pad(b, (0, cp_out - c_out)).astype(jnp.float32).reshape(1, cp_out)
        zero_row = jnp.zeros((1, cp_out), jnp.float32)

        # neighbour projection (hoisted out of the aggregation loop)
        h_nb = tiled_matmul_add(h_p, wl_t, zero_row, mat_dtype)
        # self/root projection + lin_l bias (f32 epilogue term)
        s_self = tiled_matmul_add(h_p, wr_t, b_row, jnp.float32)
        # mean aggregation: out = A_mean @ (x W_l^T) + (x W_r^T + b)
        out = tiled_matmul_add(a_p, h_nb, s_self, jnp.float32)

        if li != n_layers - 1:
            sc = jnp.pad(bn_scale, (0, cp_out - c_out)).astype(jnp.float32).reshape(1, cp_out)
            sh = jnp.pad(bn_shift, (0, cp_out - c_out)).astype(jnp.float32).reshape(1, cp_out)
            h_p = tiled_transition(out, sc, sh, mat_dtype)
        else:
            h_p = out

        c_in, cp_in = c_out, cp_out

    return h_p[:n, :c_in]


# ----------------------------------------------------------------------------- reference
def reference_forward(x, edge_index, layer_params, bn_params, use_bf16=True):
    gamma, beta, mean, var, eps = bn_params
    scale = gamma * jax.lax.rsqrt(var + eps)
    shift = beta - mean * scale
    cast = (lambda t: t.astype(jnp.bfloat16)) if use_bf16 else (lambda t: t)

    a = cast(build_mean_adj(edge_index, x.shape[0], jnp.float32))
    h = x
    n_layers = len(layer_params)
    for li, (wl, wr, b) in enumerate(layer_params):
        xc = cast(h)
        h_nb = cast(jnp.dot(xc, cast(wl.T), preferred_element_type=jnp.float32))
        s = jnp.dot(xc, cast(wr.T), preferred_element_type=jnp.float32) + b[None, :]
        h = jnp.dot(a, h_nb, preferred_element_type=jnp.float32) + s
        if li != n_layers - 1:
            h = cast(jnp.maximum(h, 0.0) * scale[None, :] + shift[None, :]
                     ).astype(jnp.float32)
    return h


# ----------------------------------------------------------------------------- main
if __name__ == "__main__":
    # Small SAGE_encoder instance: neurons_per_layer = [16, 32, 32], args.hidden = 32.
    N = 300
    neurons_per_layer = [16, 32, 32]
    hidden = neurons_per_layer[1]

    key = jax.random.PRNGKey(0)
    keys = jax.random.split(key, 12)

    x = jax.random.normal(keys[0], (N, neurons_per_layer[0]), jnp.float32)

    layer_params = []
    kidx = 1
    for c_in, c_out in zip(neurons_per_layer[:-1], neurons_per_layer[1:]):
        bound = 1.0 / (c_in ** 0.5)
        wl = jax.random.uniform(keys[kidx], (c_out, c_in), jnp.float32, -bound, bound)
        wr = jax.random.uniform(keys[kidx + 1], (c_out, c_in), jnp.float32, -bound, bound)
        b = jax.random.uniform(keys[kidx + 2], (c_out,), jnp.float32, -bound, bound)
        layer_params.append((wl, wr, b))
        kidx += 3

    gamma = jax.random.uniform(keys[kidx], (hidden,), jnp.float32, 0.5, 1.5)
    beta = 0.1 * jax.random.normal(keys[kidx + 1], (hidden,), jnp.float32)
    running_mean = 0.1 * jax.random.normal(keys[kidx + 2], (hidden,), jnp.float32)
    running_var = jax.random.uniform(keys[kidx + 3], (hidden,), jnp.float32, 0.5, 1.5)
    bn_params = (gamma, beta, running_mean, running_var, 1e-5)

    # Deterministic ring graph (both directions), no self loops.
    src = jnp.arange(N, dtype=jnp.int32)
    dst = (src + 1) % N
    edge_index = jnp.concatenate(
        [jnp.stack([src, dst]), jnp.stack([dst, src])], axis=1)  # [2, 2N]

    out = sage_encoder_forward(x, edge_index, layer_params, bn_params, use_bf16=True)
    out = jax.block_until_ready(out)

    ref = reference_forward(x, edge_index, layer_params, bn_params, use_bf16=True)
    assert out.shape == (N, neurons_per_layer[-1])
    max_err = float(jnp.max(jnp.abs(out - ref)))
    assert jnp.allclose(out, ref, atol=1e-2, rtol=1e-2), \
        f"mismatch vs reference, max abs err {max_err}"

    print("KERNEL_OK")
</pallas_src>

<mosaic_0001>
module attributes {stable_mosaic.version = 11 : i64} {
  func.func @matmul_add_kernel(%arg0: i32, %arg1: i32, %arg2: i32, %arg3: memref<128x128xbf16, #tpu.memory_space<vmem>>, %arg4: memref<128x128xbf16, #tpu.memory_space<vmem>>, %arg5: memref<1x128xf32, #tpu.memory_space<vmem>>, %arg6: memref<128x128xbf16, #tpu.memory_space<vmem>>, %arg7: memref<128x128xf32, #tpu.memory_space<vmem>>) attributes {dimension_semantics = [#tpu.dimension_semantics<parallel>, #tpu.dimension_semantics<parallel>, #tpu.dimension_semantics<arbitrary>], iteration_bounds = array<i64: 3, 1, 1>, scalar_prefetch = 0 : i64, scratch_operands = 1 : i64, tpu.core_type = #tpu.core_type<tc>, window_params = [{transform_indices = @transform_0, window_bounds = array<i64: 128, 128>}, {transform_indices = @transform_1, window_bounds = array<i64: 128, 128>}, {transform_indices = @transform_2, window_bounds = array<i64: 1, 128>}, {transform_indices = @transform_3, window_bounds = array<i64: 128, 128>}]} {
    %c0_i32 = arith.constant 0 : i32
    %0 = arith.cmpi eq, %arg2, %c0_i32 : i32
    %1 = arith.extui %0 : i1 to i32
    %c0_i32_0 = arith.constant 0 : i32
    %2 = arith.cmpi ne, %1, %c0_i32_0 : i32
    scf.if %2 {
      %cst_10 = arith.constant 0.000000e+00 : f32
      %12 = vector.broadcast %cst_10 : f32 to vector<128x128xf32>
      %c0_11 = arith.constant 0 : index
      %c0_12 = arith.constant 0 : index
      %13 = vector.load %arg7[%c0_11, %c0_12] : memref<128x128xf32, #tpu.memory_space<vmem>>, vector<128x128xf32>
      tpu.vector_store %arg7[%c0_11, %c0_12], %12 {strides = array<i32>} : memref<128x128xf32, #tpu.memory_space<vmem>>, vector<128x128xf32>,
    } else {
    }
    %c0 = arith.constant 0 : index
    %c0_1 = arith.constant 0 : index
    %3 = vector.load %arg7[%c0, %c0_1] : memref<128x128xf32, #tpu.memory_space<vmem>>, vector<128x128xf32>
    %c0_2 = arith.constant 0 : index
    %c0_3 = arith.constant 0 : index
    %4 = vector.load %arg3[%c0_2, %c0_3] : memref<128x128xbf16, #tpu.memory_space<vmem>>, vector<128x128xbf16>
    %c0_4 = arith.constant 0 : index
    %c0_5 = arith.constant 0 : index
    %5 = vector.load %arg4[%c0_4, %c0_5] : memref<128x128xbf16, #tpu.memory_space<vmem>>, vector<128x128xbf16>
    %cst = arith.constant dense<0.000000e+00> : vector<128x128xf32>
    %6 = tpu.matmul %4, %5, %cst {dimension_numbers = #tpu.dot_dimension_numbers<[1], [0], [0], [1], [0, 0, 1, 1], [], []>} : vector<128x128xbf16>, vector<128x128xbf16>, vector<128x128xf32> -> vector<128x128xf32>
    %7 = arith.addf %3, %6 : vector<128x128xf32>
    %c0_6 = arith.constant 0 : index
    %c0_7 = arith.constant 0 : index
    %8 = vector.load %arg7[%c0_6, %c0_7] : memref<128x128xf32, #tpu.memory_space<vmem>>, vector<128x128xf32>
    tpu.vector_store %arg7[%c0_6, %c0_7], %7 {strides = array<i32>} : memref<128x128xf32, #tpu.memory_space<vmem>>, vector<128x128xf32>,
    %c0_i32_8 = arith.constant 0 : i32
    %9 = arith.cmpi eq, %arg2, %c0_i32_8 : i32
    %10 = arith.extui %9 : i1 to i32
    %c0_i32_9 = arith.constant 0 : i32
    %11 = arith.cmpi ne, %10, %c0_i32_9 : i32
    scf.if %11 {
      %c0_10 = arith.constant 0 : index
      %c0_11 = arith.constant 0 : index
      %12 = vector.load %arg7[%c0_10, %c0_11] : memref<128x128xf32, #tpu.memory_space<vmem>>, vector<128x128xf32>
      %c0_12 = arith.constant 0 : index
      %c0_13 = arith.constant 0 : index
      %13 = vector.load %arg5[%c0_12, %c0_13] : memref<1x128xf32, #tpu.memory_space<vmem>>, vector<1x128xf32>
      %14 = vector.broadcast %13 : vector<1x128xf32> to vector<128x128xf32>
      %15 = arith.addf %12, %14 : vector<128x128xf32>
      %16 = arith.truncf %15 : vector<128x128xf32> to vector<128x128xbf16>
      %c0_14 = arith.constant 0 : index
      %c0_15 = arith.constant 0 : index
      %17 = vector.load %arg6[%c0_14, %c0_15] : memref<128x128xbf16, #tpu.memory_space<vmem>>, vector<128x128xbf16>
      tpu.vector_store %arg6[%c0_14, %c0_15], %16 {strides = array<i32>} : memref<128x128xbf16, #tpu.memory_space<vmem>>, vector<128x128xbf16>,
    } else {
    }
    return
  }
  func.func @transform_0(%arg0: i32, %arg1: i32, %arg2: i32) -> (i32, i32) {
    %c0_i32 = arith.constant 0 : i32
    return %arg0, %arg2 : i32, i32
  }
  func.func @transform_1(%arg0: i32, %arg1: i32, %arg2: i32) -> (i32, i32) {
    %c0_i32 = arith.constant 0 : i32
    return %arg2, %arg1 : i32, i32
  }
  func.func @transform_2(%arg0: i32, %arg1: i32, %arg2: i32) -> (i32, i32) {
    %c0_i32 = arith.constant 0 : i32
    %c0_i32_0 = arith.constant 0 : i32
    return %c0_i32, %arg1 : i32, i32
  }
  func.func @transform_3(%arg0: i32, %arg1: i32, %arg2: i32) -> (i32, i32) {
    %c0_i32 = arith.constant 0 : i32
    return %arg0, %arg1 : i32, i32
  }
}

</mosaic_0001>

<bundles_post_ra>
// kernel: tpu_custom_call.1
= control target key start
LH: loop header
LB: loop body
LE: loop exit
PB: predicated region body
PF: predicated region fallthrough
CT: control target
= control target key end

     0   :  { %8 = vsyncpa [#allocation4], 0  ;;  %s1498_s0 = inlined_call_operand.hbm [shape: bf16[384,128], index: 0, kind: input, shape index: {}]   ;;  %s1499_s1 = inlined_call_operand.hbm [shape: bf16[128,128], index: 1, kind: input, shape index: {}]   ;;  %s1500_s2 = inlined_call_operand.vmem [shape: f32[1,128], index: 2, kind: input, shape index: {}]   ;;  %s1501_s3 = inlined_call_operand.hbm [shape: bf16[384,128], index: 3, kind: output, shape index: {}]  }
   0x1   :  { %10 = vsyncpa [#allocation4 + $0x1], 0 }
   0x2   :  { %11 = vsyncpa [#allocation7], 0 }
   0x3   :  { %12 = vsyncpa [#allocation5], 0 }
   0x4   :  { %14 = vsyncpa [#allocation5 + $0x1], 0  ;;  %s1247_s12 = smov 0   ;;  %s1249_s13 = smov 0  }
   0x5   :  { %s1251_s14 = smov 0   ;;  %s1253_s15 = smov 0  }
   0x6   :  { %s1255_s16 = smov 0   ;;  %s1257_s17 = smov 0  }
   0x7 LB: > { %s801_s18 = sadd.s32 4294967295, %s1218_s17   ;;  %s802_s19 = sadd.s32 4294967294, %s1218_s17   ;;  %s1218_s17 = sphi %s1257_s17, %s20_s17   ;;  %s1214_s16 = sphi %s1255_s16, %s1524_s16   ;;  %s1210_s15 = sphi %s1253_s15, %s1523_s15   ;;  %s1206_s14 = sphi %s1251_s14, %s1522_s14   ;;  %s1202_s13 = sphi %s1249_s13, %s1521_s13   ;;  %s1198_s12 = sphi %s1247_s12, %s1520_s12  }
   0x8   : > { %p61_p0 = scmp.ne.s32.totalorder %s1202_s13, %s1198_s12  ;;  %p1281_p1 = scmp.eq.s32.totalorder %s801_s18, 0 }
   0x9   : > { %p1285_p2 = scmp.eq.s32.totalorder %s801_s18, 2  ;;  %p147_p3 = scmp.eq.s32.totalorder %s802_s19, 2 }
   0xa   : > { %s1506_s20 = scalar_select %p1281_p1, 1, 0 }
   0xb   : > { %s1507_s21 = scalar_select %p1285_p2, 1, 0 }
   0xc   : > { %p1291_p4 = por %p1281_p1, %p61_p0  ;;  %p803_p5 = scmp.ge.s32.totalorder %s1218_s17, 1 }
   0xd   : > { %p1296_p6 = por %p147_p3, %p61_p0  ;;  %p154_p7 = scmp.lt.s32.totalorder %s1218_s17, 4 }
   0xe   : > { %s1508_s22 = scalar_select %p1291_p4, 1, 0 }
   0xf   : > { %s1509_s23 = scalar_select %p1296_p6, 1, 0 }
  0x10   : > { %p1301_p8 = pnand %p803_p5, %p154_p7  ;;  %s1220_s25 = smov [#allocation6]  }
  0x11   : > { %s170_s26 = sshll.u32 %s1220_s25, 4  ;;  %s39_s28 = sadd.s32 1, %s1214_s16  ;;  %s171_s26 = int_to_ptr.vmem [resolvable:$true] %s170_s26 }
  0x12   : > { %s1510_s24 = scalar_select %p1301_p8, 1, 0 }
  0x13   : > { %p989_p9 = pneg %p1301_p8  ;;  %s1074_s4 = scalar_lea.hbm %s1499_s1, 1024 }
  0x14   : > { %p1075_p11 = scmp.ne.s32.totalorder %s1499_s1, %s1074_s4  ;;  %p1081_p3 = scmp.lt.u32.totalorder %s1074_s4, %s1499_s1 }
  0x15   : > { %p1309_p10 = pnand %p989_p9, %p1281_p1 }
  0x17   : > { %p1076_p12 = pneg %p1309_p10 }
  0x19   : > { %p1077_p13 = pnand %p1076_p12, %p1075_p11 }
  0x1b   : > { %p1078_p0 = pneg %p1077_p13 }
  0x1d   : > { %p1083_p5 = pnand %p1081_p3, %p1078_p0 }
  0x1f   : > { %1086 = shalt.err (!%p1083_p5)
}
  0x20   : > { %s1087_s9 = scalar_lea.vmem %s171_s26, 1024  ;;  %p1095_p1 = scmp.lt.s32.totalorder %s171_s26, %s171_s26 }
  0x21   : > { %p1088_p7 = scmp.ne.s32.totalorder %s171_s26, %s1087_s9  ;;  %p1096_p4 = scmp.lt.s32.totalorder %s1087_s9, %s1087_s9 }
  0x23   : > { %p1090_p9 = pnand %p1088_p7, %p1076_p12  ;;  %p1097_p8 = por %p1096_p4, %p1095_p1 }
  0x25   : > { %p1091_p6 = pneg %p1090_p9 }
  0x27   : > { %p1098_p2 = pnand %p1097_p8, %p1091_p6 }
  0x29   : > { %1101 = shalt.err (!%p1098_p2)
}
  0x2a   : > { %s1221_s10 = smov 64   ;;  %s1222_s11 = smov 4  }
  0x2b   : > { %992 = dma.hbm_to_vmem [thread:$0]  (!%p1309_p10), %s1499_s1, 1024, %s171_s26, [#allocation7], %s1221_s10, %s1221_s10, %s1222_s11  }
  0x2c   : > { %p41_p1 = scmp.ge.s32.totalorder %s39_s28, 3  ;;  %s48_s25 = sadd.s32 1, %s1206_s14 }
  0x2d   : > { %p55_p2 = scmp.ne.s32.totalorder %s1206_s14, %s1202_s13  ;;  %p56_p4 = scmp.eq.s32.totalorder %s1218_s17, 0 }
  0x2e   : > { %s1526_s28 = smov (%p41_p1, %s39_s28), 0  ;;  %p1513_p8 = scmp.ne.s32.totalorder %s1507_s21, 0 }
  0x2f   : > { %p1339_p6 = por %p56_p4, %p55_p2  ;;  %s43_s30 = ssub.s32 %s1214_s16, %s1526_s28 }
  0x30   : > { %p1345_p11 = por %p1513_p8, %p55_p2  ;;  %p1002_p12 = scmp.lt.s32.totalorder %s1218_s17, 3 }
  0x31   : > { %p46_p10 = scmp.eq.s32.totalorder %s43_s30, 0  ;;  %s190_s26 = sand.u32 1, %s1206_s14  }
  0x32   : > { %s807_s4 = sshll.u32 %s190_s26, 6  ;;  %s852_s6 = sshll.u32 %s1214_s16, 10 }
  0x33   : > { %s1354_s5 = scalar_select %p46_p10, %s1206_s14, %s48_s25  }
  0x34   : > { %s1360_s9 = scalar_lea.hbm %s1498_s0, %s852_s6  ;;  %s194_s21 = scalar_lea.vmem [#allocation3], %s807_s4 }
  0x35   : > { %s202_s18 = sshll.u32 %s194_s21, 4  ;;  %p1366_p13 = pnand %p1002_p12, %p1339_p6  ;;  %s1362_s18 = int_to_ptr.vmem [resolvable:$true] %s202_s18 }
  0x36   : > { %s1370_s25 = scalar_lea.sflag [#allocation4], %s190_s26  ;;  %s1102_s30 = scalar_lea.hbm %s1360_s9, 1024 }
  0x37   : > { %p1103_p0 = scmp.ne.s32.totalorder %s1360_s9, %s1102_s30  ;;  %p1104_p3 = pneg %p1366_p13 }
  0x38   : > { %s1107_s29 = scalar_lea.hbm %s1498_s0, 3072  ;;  %p1108_p9 = scmp.lt.u32.totalorder %s1360_s9, %s1498_s0 }
  0x39   : > { %p1105_p5 = pnand %p1104_p3, %p1103_p0  ;;  %p1109_p1 = scmp.lt.u32.totalorder %s1107_s29, %s1102_s30 }
  0x3a   : > { %p1111_p4 = scmp.lt.u32.totalorder %s1102_s30, %s1360_s9 }
  0x3b   : > { %p1106_p7 = pneg %p1105_p5  ;;  %p1110_p2 = por %p1109_p1, %p1108_p9 }
  0x3d   : > { %p1112_p6 = por %p1111_p4, %p1110_p2 }
  0x3f   : > { %p1113_p8 = pnand %p1112_p6, %p1106_p7 }
  0x41   : > { %1116 = shalt.err (!%p1113_p8)
}
  0x42   : > { %s1117_s26 = scalar_lea.vmem %s1362_s18, 1024  ;;  %s1223_s21 = smov [#allocation3]  }
  0x43   : > { %p1118_p12 = scmp.ne.s32.totalorder %s1362_s18, %s1117_s26  ;;  %s1122_s4 = sshll.u32 %s1223_s21, 4  ;;  %s1123_s4 = int_to_ptr.vmem [resolvable:$false] %s1122_s4 }
  0x44   : > { %s1124_s6 = scalar_lea.vmem %s1123_s4, 2048  ;;  %p1125_p5 = scmp.lt.s32.totalorder %s1362_s18, %s1123_s4 }
  0x45   : > { %p1120_p10 = pnand %p1118_p12, %p1104_p3  ;;  %p1126_p9 = scmp.lt.s32.totalorder %s1124_s6, %s1117_s26 }
  0x47   : > { %p1121_p0 = pneg %p1120_p10  ;;  %p1127_p1 = por %p1126_p9, %p1125_p5 }
  0x49   : > { %p1128_p2 = pnand %p1127_p1, %p1121_p0 }
  0x4b   : > { %1131 = shalt.err (!%p1128_p2)
}
  0x4c   : > { %996 = dma.hbm_to_vmem [thread:$0]  (!%p1366_p13), %s1360_s9, 1024, %s1362_s18, %s1370_s25, %s1221_s10, %s1221_s10, %s1222_s11  }
  0x4d   : > { %p1516_p3 = scmp.ne.s32.totalorder %s1510_s24, 0 }
  0x4e   : > { %s1404_s30 = sand.u32 (!%p1516_p3), 1, %s1202_s13   ;;  %p1517_p7 = scmp.ne.s32.totalorder (!%p1516_p3), %s1508_s22, 0 }
  0x4f   : > { %214 = sbr.rel (%p1516_p3) target bundleno = 365 (0x16d), region = 32  ;;  %s811_s29 = sshll.u32 (!%p1516_p3), %s1404_s30, 6 }
  0x50   : > { %s217_s7 = scalar_lea.sflag (!%p1516_p3), [#allocation4], %s1404_s30  ;;  %s1410_s19 = scalar_lea.vmem (!%p1516_p3), [#allocation3], %s811_s29 }
  0x56   : > { %1185 = dma.done.wait (%p1517_p7), %s217_s7, 1024  }
  0x57   : > { %1187 = vsyncadd (%p1517_p7), %s217_s7, 4294966272  ;;  %p1518_p13 = scmp.ne.s32.totalorder %s1506_s20, 0 }
  0x59   : > { %1189 = dma.done.wait (%p1518_p13), [#allocation7], 1024  }
  0x5a   : > { %1191 = vsyncadd (%p1518_p13), [#allocation7], 4294966272  ;;  %v1058_v0 = vld [vmem:[#allocation6] sm:$0xff]   ;;  %v1059_v1 = vld [vmem:[#allocation6 + $0x8] sm:$0xff]   ;;  %s1433_s24 = scalar_lea.vmem [#allocation8], %s811_s29  ;;  %s869_s11 = sshll.u32 %s1210_s15, 10 }
  0x5b   : > { %933 = vmatprep.subr.bf16.mxu0 %v1058_v0  ;;  %965 = vmatprep.subr.bf16.mxu1 %v1058_v0  ;;  %v1060_v2 = vld [vmem:[#allocation6 + $0x10] sm:$0xff]   ;;  %v1061_v3 = vld [vmem:[#allocation6 + $0x18] sm:$0xff]   ;;  %v1066_v4 = vld [vmem:[%s1410_s19] sm:$0xff]   ;;  %s687_s10 = sshll.u32 %s1433_s24, 4  ;;  %s1446_s18 = scalar_lea.hbm %s1501_s3, %s869_s11  ;;  %s1441_s10 = int_to_ptr.vmem [resolvable:$true] %s687_s10 }
  0x5c   : > { %934 = vmatpush3.bf16.msra.mxu0 %v1058_v0  ;;  %973 = vmatpush3.bf16.msra.mxu1 %v1058_v0  ;;  %v1067_v5 = vld [vmem:[%s1410_s19 + $0x20] sm:$0xff]   ;;  %v1063_v7 = vld [vmem:[#allocation6 + $0x28] sm:$0xff]   ;;  %v1064_v8 = vld [vmem:[#allocation6 + $0x30] sm:$0xff]   ;;  %s673_s25 = scalar_lea.sflag [#allocation5], %s1404_s30  ;;  %s1132_s8 = scalar_lea.vmem %s1441_s10, 1024 }
  0x5d   : > { %935 = vmatprep.subr.bf16.mxu0 %v1059_v1  ;;  %966 = vmatprep.subr.bf16.mxu1 %v1059_v1  ;;  %v1062_v6 = vld [vmem:[#allocation6 + $0x20] sm:$0xff]   ;;  %v1065_v9 = vld [vmem:[#allocation6 + $0x38] sm:$0xff]   ;;  %v1068_v10 = vld [vmem:[%s1410_s19 + $0x8] sm:$0xff]   ;;  %p1133_p4 = scmp.ne.s32.totalorder %s1441_s10, %s1132_s8  ;;  %s1224_s26 = smov [#allocation8]  }
  0x5e   : > { %949 = vmatprep.mubr.bf16.mxu0 %v1066_v4  ;;  %957 = vmatprep.mubr.bf16.mxu1 %v1067_v5  ;;  %v1069_v11 = vld [vmem:[%s1410_s19 + $0x28] sm:$0xff]   ;;  %v1070_v12 = vld [vmem:[%s1410_s19 + $0x10] sm:$0xff]   ;;  %v1072_v14 = vld [vmem:[%s1410_s19 + $0x18] sm:$0xff]   ;;  %s1136_s21 = sshll.u32 %s1224_s26, 4  ;;  %s1137_s21 = int_to_ptr.vmem [resolvable:$false] %s1136_s21 }
  0x5f   : > { %v1071_v13 = vld [vmem:[%s1410_s19 + $0x30] sm:$0xff]   ;;  %v1073_v15 = vld [vmem:[%s1410_s19 + $0x38] sm:$0xff]   ;;  %v830_v17 = vld [vmem:[%s1500_s2] ss:$0 sm:$0xff]  ;;  %p1134_p6 = pnand %p1133_p4, %p1345_p11  ;;  %s1138_s4 = scalar_lea.vmem %s1137_s21, 2048 }
  0x60   : > { %936 = vmatpush3.bf16.msra.mxu0 %v1059_v1  ;;  %974 = vmatpush3.bf16.msra.mxu1 %v1059_v1  ;;  %p1139_p12 = scmp.lt.s32.totalorder %s1441_s10, %s1137_s21  ;;  %p1140_p10 = scmp.lt.s32.totalorder %s1138_s4, %s1132_s8 }
  0x61   : > { %937 = vmatprep.subr.bf16.mxu0 %v1060_v2  ;;  %967 = vmatprep.subr.bf16.mxu1 %v1060_v2  ;;  %p1135_p8 = pneg %p1134_p6 }
  0x62   : > { %p1141_p0 = por %p1140_p10, %p1139_p12 }
  0x64   : > { %938 = vmatpush3.bf16.msra.mxu0 %v1060_v2  ;;  %975 = vmatpush3.bf16.msra.mxu1 %v1060_v2  ;;  %p1142_p5 = pnand %p1141_p0, %p1135_p8 }
  0x65   : > { %939 = vmatprep.subr.bf16.mxu0 %v1061_v3  ;;  %968 = vmatprep.subr.bf16.mxu1 %v1061_v3 }
  0x68   : > { %940 = vmatpush3.bf16.msra.mxu0 %v1061_v3  ;;  %976 = vmatpush3.bf16.msra.mxu1 %v1061_v3 }
  0x69   : > { %941 = vmatprep.subr.bf16.mxu0 %v1062_v6  ;;  %969 = vmatprep.subr.bf16.mxu1 %v1062_v6 }
  0x6c   : > { %942 = vmatpush3.bf16.msra.mxu0 %v1062_v6  ;;  %977 = vmatpush3.bf16.msra.mxu1 %v1062_v6 }
  0x6d   : > { %943 = vmatprep.subr.bf16.mxu0 %v1063_v7  ;;  %970 = vmatprep.subr.bf16.mxu1 %v1063_v7 }
  0x70   : > { %944 = vmatpush3.bf16.msra.mxu0 %v1063_v7  ;;  %978 = vmatpush3.bf16.msra.mxu1 %v1063_v7 }
  0x71   : > { %945 = vmatprep.subr.bf16.mxu0 %v1064_v8  ;;  %971 = vmatprep.subr.bf16.mxu1 %v1064_v8 }
  0x74   : > { %946 = vmatpush3.bf16.msra.mxu0 %v1064_v8  ;;  %979 = vmatpush3.bf16.msra.mxu1 %v1064_v8 }
  0x75   : > { %947 = vmatprep.subr.bf16.mxu0 %v1065_v9  ;;  %972 = vmatprep.subr.bf16.mxu1 %v1065_v9 }
  0x78   : > { %948 = vmatpush3.bf16.msra.mxu0 %v1065_v9  ;;  %980 = vmatpush3.bf16.msra.mxu1 %v1065_v9 }
  0x7b   : > { %950 = vmatmul.mubr.bf16.vlgmr.msra.gmra.mrb[0].mxu0 %v1068_v10  ;;  %958 = vmatmul.mubr.bf16.vlgmr.msra.gmra.mrb[0].mxu1 %v1069_v11 }
  0x7c   : > { %953 = vmatprep.mubr.bf16.mxu0 %v1070_v12  ;;  %961 = vmatprep.mubr.bf16.mxu1 %v1071_v13 }
  0x83   : > { %954 = vmatmul.mubr.bf16.gmra.mrb[4].mxu0 %v1072_v14  ;;  %962 = vmatmul.mubr.bf16.gmra.mrb[4].mxu1 %v1073_v15 }
 0x14e   : > { %v951_v16 = vpop.f32.mrb[0].mxu0  ;;  %v959_v18 = vpop.f32.mrb[0].mxu1 }
 0x14f   : > { %v455_v19 = vpop.f32.mrb[1].mxu0  ;;  %v487_v20 = vpop.f32.mrb[1].mxu1  ;;  %v578_v23 = vadd.f32 %v951_v16, %v830_v17  ;;  %v586_v24 = vadd.f32 %v959_v18, %v830_v17 }
 0x150   : > { %v952_v21 = vpop.f32.mrb[2].mxu0  ;;  %v960_v22 = vpop.f32.mrb[2].mxu1  ;;  %v576_v29 = vadd.f32 %v830_v17, %v455_v19  ;;  %v584_v30 = vadd.f32 %v830_v17, %v487_v20 }
 0x151   : > { %v579_v25 = vadd.f32 %v952_v21, %v830_v17  ;;  %v587_v26 = vadd.f32 %v960_v22, %v830_v17  ;;  %v458_v27 = vpop.f32.mrb[3].mxu0  ;;  %v490_v28 = vpop.f32.mrb[3].mxu1 }
 0x152   : > { %v577_v31 = vadd.f32 %v830_v17, %v458_v27  ;;  %v585_v32 = vadd.f32 %v830_v17, %v490_v28 }
 0x153   : > { %v878_v33 = vpack.c.bf16 %v579_v25, %v578_v23  ;;  %v898_v34 = vpack.c.bf16 %v587_v26, %v586_v24 }
 0x154   : > { %v873_v35 = vpack.c.bf16 %v577_v31, %v576_v29  ;;  %v893_v36 = vpack.c.bf16 %v585_v32, %v584_v30 }
 0x155   : > { %910 = vst [vmem:[%s1433_s24 + $0x8] sm:$0xff] %v878_v33   ;;  %914 = vst [vmem:[%s1433_s24 + $0x28] sm:$0xff] %v898_v34  }
 0x156   : > { %874 = vst [vmem:[%s1433_s24] sm:$0xff] %v873_v35   ;;  %913 = vst [vmem:[%s1433_s24 + $0x20] sm:$0xff] %v893_v36   ;;  %v955_v37 = vpop.f32.mrb[4].mxu0  ;;  %v963_v38 = vpop.f32.mrb[4].mxu1 }
 0x157   : > { %v471_v39 = vpop.f32.mrb[5].mxu0  ;;  %v503_v40 = vpop.f32.mrb[5].mxu1  ;;  %v582_v43 = vadd.f32 %v955_v37, %v830_v17  ;;  %v590_v44 = vadd.f32 %v963_v38, %v830_v17 }
 0x158   : > { %v956_v41 = vpop.f32.mrb[6].mxu0  ;;  %v964_v42 = vpop.f32.mrb[6].mxu1  ;;  %v580_v49 = vadd.f32 %v830_v17, %v471_v39  ;;  %v588_v50 = vadd.f32 %v830_v17, %v503_v40 }
 0x159   : > { %v583_v45 = vadd.f32 %v956_v41, %v830_v17  ;;  %v591_v46 = vadd.f32 %v964_v42, %v830_v17  ;;  %v474_v47 = vpop.f32.mrb[7].mxu0  ;;  %v506_v48 = vpop.f32.mrb[7].mxu1 }
 0x15a   : > { %v581_v51 = vadd.f32 %v830_v17, %v474_v47  ;;  %v589_v52 = vadd.f32 %v830_v17, %v506_v48 }
 0x15b   : > { %v888_v53 = vpack.c.bf16 %v583_v45, %v582_v43  ;;  %v908_v54 = vpack.c.bf16 %v591_v46, %v590_v44 }
 0x15c   : > { %v883_v55 = vpack.c.bf16 %v581_v51, %v580_v49  ;;  %v903_v56 = vpack.c.bf16 %v589_v52, %v588_v50 }
 0x15d   : > { %912 = vst [vmem:[%s1433_s24 + $0x18] sm:$0xff] %v888_v53   ;;  %916 = vst [vmem:[%s1433_s24 + $0x38] sm:$0xff] %v908_v54  }
 0x15e   : > { %911 = vst [vmem:[%s1433_s24 + $0x10] sm:$0xff] %v883_v55   ;;  %915 = vst [vmem:[%s1433_s24 + $0x30] sm:$0xff] %v903_v56  }
 0x15f   : > { %1145 = shalt.err (!%p1142_p5)
}
 0x160   : > { %s1146_s6 = scalar_lea.hbm %s1446_s18, 1024  ;;  %s1150_s19 = scalar_lea.hbm %s1501_s3, 3072 }
 0x161   : > { %p1147_p9 = scmp.ne.s32.totalorder %s1446_s18, %s1146_s6  ;;  %p1151_p3 = scmp.lt.u32.totalorder %s1446_s18, %s1501_s3 }
 0x162   : > { %p1152_p7 = scmp.lt.u32.totalorder %s1150_s19, %s1146_s6  ;;  %p1154_p4 = scmp.lt.u32.totalorder %s1146_s6, %s1446_s18 }
 0x163   : > { %p1148_p1 = pnand %p1147_p9, %p1345_p11 }
 0x164   : > { %p1153_p13 = por %p1152_p7, %p1151_p3 }
 0x165   : > { %p1149_p2 = pneg %p1148_p1 }
 0x166   : > { %p1155_p6 = por %p1154_p4, %p1153_p13 }
 0x168   : > { %p1156_p8 = pnand %p1155_p6, %p1149_p2 }
 0x16a   : > { %1159 = shalt.err (!%p1156_p8)
}
 0x16b   : > { %s1225_s24 = smov 64   ;;  %s1226_s11 = smov 4  }
 0x16c   : > { %987 = dma.vmem_to_hbm [thread:$0]  (%p1345_p11), %s1441_s10, 1024, %s1446_s18, %s673_s25, %s1225_s24, %s1225_s24, %s1226_s11  }
 0x16d PF: > { %p1004_p12 = scmp.ge.s32.totalorder %s1218_s17, 2  ;;  %s702_s15 = sand.u32 1, %s1198_s12  }
 0x16e   : > { %p1519_p10 = scmp.ne.s32.totalorder %s1509_s23, 0  ;;  %s703_s9 = scalar_lea.sflag [#allocation5], %s702_s15 }
 0x170   : > { %p998_p0 = pnand %p1004_p12, %p1519_p10 }
 0x172   : > { %1193 = dma.done.wait (!%p998_p0), %s703_s9, 1024  }
 0x173   : > { %1195 = vsyncadd (!%p998_p0), %s703_s9, 4294966272  ;;  %s20_s17 = sadd.s32 1, %s1218_s17   ;;  %s1520_s12 = smov %s1202_s13 }
 0x174   : > { %p17_p5 = scmp.ge.s32.totalorder %s20_s17, 5   ;;  %s1521_s13 = smov %s1206_s14 }
 0x175   : > { %s1522_s14 = smov %s1354_s5  ;;  %s1523_s15 = smov %s1214_s16 }
 0x176   : > { %s1524_s16 = smov %s1526_s28  ;;  %19 = sbr.rel (!%p17_p5) target bundleno = 7 (0x7), region = 93 }
 0x17d   :  { %708 = vsyncpa [#allocation4], 1 }
 0x17e   :  { %710 = vsyncpa [#allocation4 + $0x1], 1 }
 0x17f   :  { %711 = vsyncpa [#allocation7], 1 }
 0x180   :  { %712 = vsyncpa [#allocation5], 1 }
 0x181   :  { %714 = vsyncpa [#allocation5 + $0x1], 1 }

</bundles_post_ra>
